<compile_context>
chip_gen: v7x
topology: tpu7x:2x2x1
jax: 0.10.0
libtpu: 0.0.40
codegen_flags: <defaults>
</compile_context>

<pallas_src>
import jax
import jax.numpy as jnp
from jax.experimental import pallas as pl
from jax.experimental.pallas import tpu as pltpu

_LANES = 1024          # lane-dense last dim (multiple of 128)
_MAX_TILE_ROWS = 512   # 512 x 1024 f32 = 2 MiB per live tile buffer


def _random_gamma_kernel(scalars_ref, x_ref, o_ref):
    """Elementwise: scale -> x ** gamma -> clamp(0,1) -> nan_to_num(0)."""
    g = scalars_ref[0]       # gamma   (f32 scalar in SMEM)
    scale = scalars_ref[1]   # dtype scale (1.0 for float inputs, 1/max for ints)

    x = x_ref[...].astype(jnp.float32) * scale
    # gamma > 0 always (range (0.5, 1.5)), so:
    #   x <= 0 or NaN  -> 0   (pow NaN / clamp-to-0 path + nan_to_num)
    #   x  > 0         -> min(exp(g * log(x)), 1)   (clamp(.., 1.0))
    y = jnp.where(x > 0.0,
                  jnp.minimum(jnp.exp(g * jnp.log(x)), 1.0),
                  0.0)
    o_ref[...] = y


def random_gamma_pallas(x, gamma):
    """Apply (x ** gamma).clamp(0,1) with nan_to_num via a Pallas TPU kernel.

    `gamma` is a scalar (python float or 0-d jax array), the equivalent of the
    torch.rand(1)-derived gamma in the PyTorch module.
    """
    orig_shape = x.shape
    n = x.size

    # Fused ToDtype(torch.float32, scale=True): keep the raw dtype for the
    # kernel read and scale inside the kernel.
    if jnp.issubdtype(x.dtype, jnp.floating):
        scale = 1.0
    else:
        # TODO(synk): signed integer scaling here (divide by iinfo.max) does not
        # match torchvision ToDtype(scale=True) semantics for signed dtypes.
        scale = 1.0 / float(jnp.iinfo(x.dtype).max)

    in_itemsize = jnp.dtype(x.dtype).itemsize

    # Flatten to a lane-dense 2D slab (rows, _LANES), padding the tail.
    rows = pl.cdiv(n, _LANES)
    pad = rows * _LANES - n
    flat = x.reshape(-1)
    if pad:
        flat = jnp.pad(flat, (0, pad))
    x2d = flat.reshape(rows, _LANES)

    tile_rows = min(_MAX_TILE_ROWS, rows)
    grid = (pl.cdiv(rows, tile_rows),)

    scalars = jnp.stack([
        jnp.asarray(gamma, dtype=jnp.float32),
        jnp.asarray(scale, dtype=jnp.float32),
    ])

    cost = pl.CostEstimate(
        flops=5 * n,
        transcendentals=2 * n,            # exp + log per element
        bytes_accessed=n * in_itemsize + n * 4,
    )

    out2d = pl.pallas_call(
        _random_gamma_kernel,
        out_shape=jax.ShapeDtypeStruct((rows, _LANES), jnp.float32),
        grid=grid,
        in_specs=[
            pl.BlockSpec(memory_space=pltpu.MemorySpace.SMEM),        # [gamma, scale]
            pl.BlockSpec((tile_rows, _LANES), lambda i: (i, 0)),      # input tile
        ],
        out_specs=pl.BlockSpec((tile_rows, _LANES), lambda i: (i, 0)),
        compiler_params=pltpu.CompilerParams(
            dimension_semantics=("parallel",),
        ),
        cost_estimate=cost,
    )(scalars, x2d)

    return out2d.reshape(-1)[:n].reshape(orig_shape)


class RandomGamma:
    """JAX/Pallas port of the PyTorch RandomGamma module."""

    def __init__(self, gamma_range=(0.5, 1.5)):
        self.gamma_range = gamma_range

    def __call__(self, x, key):
        lo, hi = self.gamma_range
        # Equivalent of: torch.rand(1) * (hi - lo) + lo
        gamma = jax.random.uniform(key, (), dtype=jnp.float32) * (hi - lo) + lo
        return random_gamma_pallas(x, gamma)


def _reference(x, gamma):
    """Torch-faithful reference in plain JAX."""
    if jnp.issubdtype(x.dtype, jnp.floating):
        xf = x.astype(jnp.float32)
    else:
        xf = x.astype(jnp.float32) / float(jnp.iinfo(x.dtype).max)
    y = jnp.clip(jnp.power(xf, gamma), 0.0, 1.0)
    return jnp.where(jnp.isfinite(y), y, 0.0)


if __name__ == "__main__":
    key = jax.random.PRNGKey(0)
    k_gamma, k_x, k_u8 = jax.random.split(key, 3)

    # Small NCHW input, values in [0, 1], with some negatives/zeros to
    # exercise the NaN -> 0 / clamp paths.
    B, C, H, W = 2, 4, 16, 16
    x = jax.random.uniform(k_x, (B, C, H, W), dtype=jnp.float32)
    x = x.at[0, 0, 0, :4].set(jnp.array([-0.5, -0.1, 1.0, 0.0], dtype=jnp.float32))

    aug = RandomGamma(gamma_range=(0.5, 1.5))
    out = jax.block_until_ready(aug(x, k_gamma))

    gamma_ref = jax.random.uniform(k_gamma, (), dtype=jnp.float32) * 1.0 + 0.5
    ref = _reference(x, gamma_ref)
    assert out.shape == x.shape and out.dtype == jnp.float32
    assert jnp.allclose(out, ref, atol=1e-5, rtol=1e-5), "float32 path mismatch"

    # Integer (uint8) input exercises the fused ToDtype scale path.
    x_u8 = jax.random.randint(k_u8, (B, C, H, W), 0, 256, dtype=jnp.int32).astype(jnp.uint8)
    out_u8 = jax.block_until_ready(random_gamma_pallas(x_u8, gamma_ref))
    ref_u8 = _reference(x_u8, gamma_ref)
    assert out_u8.shape == x_u8.shape and out_u8.dtype == jnp.float32
    assert jnp.allclose(out_u8, ref_u8, atol=1e-5, rtol=1e-5), "uint8 path mismatch"

    print("KERNEL_OK")
</pallas_src>

<mosaic_0001>
module attributes {stable_mosaic.version = 11 : i64} {
  func.func @_random_gamma_kernel(%arg0: i32, %arg1: memref<2xf32, #tpu.memory_space<smem>>, %arg2: memref<2x1024xf32, #tpu.memory_space<vmem>>, %arg3: memref<2x1024xf32, #tpu.memory_space<vmem>>) attributes {dimension_semantics = [#tpu.dimension_semantics<parallel>], iteration_bounds = array<i64: 1>, scalar_prefetch = 0 : i64, scratch_operands = 0 : i64, tpu.core_type = #tpu.core_type<tc>, window_params = [{transform_indices = @transform_0, window_bounds = array<i64: 2>}, {transform_indices = @transform_1, window_bounds = array<i64: 2, 1024>}, {transform_indices = @transform_2, window_bounds = array<i64: 2, 1024>}]} {
    %c0 = arith.constant 0 : index
    %0 = memref.load %arg1[%c0] : memref<2xf32, #tpu.memory_space<smem>>
    %c1 = arith.constant 1 : index
    %1 = memref.load %arg1[%c1] : memref<2xf32, #tpu.memory_space<smem>>
    %c0_0 = arith.constant 0 : index
    %c0_1 = arith.constant 0 : index
    %2 = vector.load %arg2[%c0_0, %c0_1] : memref<2x1024xf32, #tpu.memory_space<vmem>>, vector<2x1024xf32>
    %3 = vector.broadcast %1 : f32 to vector<2x1024xf32>
    %4 = arith.mulf %2, %3 : vector<2x1024xf32>
    %cst = arith.constant 0.000000e+00 : f32
    %5 = vector.broadcast %cst : f32 to vector<2x1024xf32>
    %6 = arith.cmpf ogt, %4, %5 : vector<2x1024xf32>
    %7 = math.log %4 : vector<2x1024xf32>
    %8 = vector.broadcast %0 : f32 to vector<2x1024xf32>
    %9 = arith.mulf %8, %7 : vector<2x1024xf32>
    %10 = math.exp %9 : vector<2x1024xf32>
    %cst_2 = arith.constant 1.000000e+00 : f32
    %11 = vector.broadcast %cst_2 : f32 to vector<2x1024xf32>
    %12 = arith.minimumf %10, %11 : vector<2x1024xf32>
    %cst_3 = arith.constant 0.000000e+00 : f32
    %13 = vector.broadcast %cst_3 : f32 to vector<2x1024xf32>
    %14 = arith.select %6, %12, %13 : vector<2x1024xi1>, vector<2x1024xf32>
    %c0_4 = arith.constant 0 : index
    %c0_5 = arith.constant 0 : index
    %15 = vector.load %arg3[%c0_4, %c0_5] : memref<2x1024xf32, #tpu.memory_space<vmem>>, vector<2x1024xf32>
    tpu.vector_store %arg3[%c0_4, %c0_5], %14 {strides = array<i32>} : memref<2x1024xf32, #tpu.memory_space<vmem>>, vector<2x1024xf32>,
    return
  }
  func.func @transform_0(%arg0: i32) -> i32 {
    %c0_i32 = arith.constant 0 : i32
    %c0_i32_0 = arith.constant 0 : i32
    return %c0_i32 : i32
  }
  func.func @transform_1(%arg0: i32) -> (i32, i32) {
    %c0_i32 = arith.constant 0 : i32
    %c0_i32_0 = arith.constant 0 : i32
    return %arg0, %c0_i32 : i32, i32
  }
  func.func @transform_2(%arg0: i32) -> (i32, i32) {
    %c0_i32 = arith.constant 0 : i32
    %c0_i32_0 = arith.constant 0 : i32
    return %arg0, %c0_i32 : i32, i32
  }
}

</mosaic_0001>

<bundles_post_ra>
// kernel: tpu_custom_call.1
= control target key start
LH: loop header
LB: loop body
LE: loop exit
PB: predicated region body
PF: predicated region fallthrough
CT: control target
= control target key end

     0   :  { %7 = vsyncpa [#allocation5], 0  ;;  %s203_s0 = inlined_call_operand.hbm [shape: f32[2], index: 0, kind: input, shape index: {}]   ;;  %s204_s1 = inlined_call_operand.hbm [shape: f32[2,1024], index: 1, kind: input, shape index: {}]   ;;  %s205_s2 = inlined_call_operand.hbm [shape: f32[2,1024], index: 2, kind: output, shape index: {}]  }
   0x1   :  { %8 = vsyncpa [#allocation3], 0 }
   0x2   :  { %9 = vsyncpa [#allocation4], 0  ;;  %s89_s11 = scalar_lea.hbm %s203_s0, 16 }
   0x3   :  { %p90_p0 = scmp.ne.s32.totalorder %s203_s0, %s89_s11  ;;  %p93_p1 = scmp.lt.u32.totalorder %s89_s11, %s203_s0 }
   0x5   :  { %p95_p2 = pnand %p93_p1, %p90_p0 }
   0x7   :  { %98 = shalt.err (!%p95_p2)
}
   0x8   :  { %s149_s16 = smov [#allocation2]   ;;  %s150_s19 = smov [#allocation6]  }
   0x9   :  { %17 = dma.hbm_to_smem %s203_s0, 16, %s149_s16, [#allocation5]  }
   0xa   :  { %s24_s20 = sshll.u32 %s150_s19, 4  ;;  %s99_s23 = scalar_lea.hbm %s204_s1, 256  ;;  %s25_s20 = int_to_ptr.vmem [resolvable:$true] %s24_s20 }
   0xb   :  { %p100_p3 = scmp.ne.s32.totalorder %s204_s1, %s99_s23  ;;  %p103_p4 = scmp.lt.u32.totalorder %s99_s23, %s204_s1 }
   0xd   :  { %p105_p5 = pnand %p103_p4, %p100_p3 }
   0xf   :  { %108 = shalt.err (!%p105_p5)
}
  0x10   :  { %s109_s28 = scalar_lea.vmem %s25_s20, 256  ;;  %p114_p7 = scmp.lt.s32.totalorder %s25_s20, %s25_s20 }
  0x11   :  { %p110_p6 = scmp.ne.s32.totalorder %s25_s20, %s109_s28  ;;  %p115_p8 = scmp.lt.s32.totalorder %s109_s28, %s109_s28 }
  0x13   :  { %p116_p9 = por %p115_p8, %p114_p7 }
  0x15   :  { %p117_p10 = pnand %p116_p9, %p110_p6 }
  0x17   :  { %120 = shalt.err (!%p117_p10)
}
  0x18   :  { %27 = dma.hbm_to_vmem [thread:$0]  %s204_s1, 256, %s25_s20, [#allocation3]  }
  0x19   :  { %143 = dma.done.wait [#allocation5], 16  }
  0x1a   :  { %144 = vsyncadd [#allocation5], 4294967280 }
  0x1b   :  { %145 = dma.done.wait [#allocation3], 256  }
  0x1c   :  { %146 = vsyncadd [#allocation3], 4294967040 }
  0x1d   :  { %34 = sfence }
  0x1e   :  { %s77_s30 = sld [smem:[#allocation2 + $0x1]]  ;;  %v37_v0 = vld [vmem:[#allocation6] sm:$0xff]  ;;  %v38_v1 = vld [vmem:[#allocation6 + $0x8] sm:$0xff]  ;;  %s35_s3 = sld [smem:[#allocation2]] }
  0x1f   :  { %s151_s1 = smov [#allocation7]  }
  0x20   :  { %s67_s4 = sshll.u32 %s151_s1, 4  ;;  %s68_s4 = int_to_ptr.vmem [resolvable:$true] %s67_s4 }
  0x21   :  { %s121_s5 = scalar_lea.vmem %s68_s4, 256  ;;  %p126_p12 = scmp.lt.s32.totalorder %s68_s4, %s68_s4 }
  0x22   :  { %p122_p11 = scmp.ne.s32.totalorder %s68_s4, %s121_s5  ;;  %p127_p13 = scmp.lt.s32.totalorder %s121_s5, %s121_s5 }
  0x24   :  { %v39_v2 = vstv %s77_s30  ;;  %v48_v6 = vstv %s35_s3  ;;  %p128_p0 = por %p127_p13, %p126_p12 }
  0x25   :  { %v40_v3 = vmul.f32 %v39_v2, %v37_v0  ;;  %v41_v4 = vmul.f32 %v39_v2, %v38_v1 }
  0x26   :  { %p129_p1 = pnand %p128_p0, %p122_p11 }
  0x27   :  { %81 = vlog2.f32 %v40_v3  ;;  %vm42_vm0 = vcmp.gt.f32.partialorder %v40_v3, 0.0  ;;  %vm43_vm1 = vcmp.gt.f32.partialorder %v41_v4, 0.0 }
  0x28   :  { %83 = vlog2.f32 %v41_v4 }
  0x31   :  { %v82_v5 = vpop.eup %81 }
  0x32   :  { %v84_v7 = vpop.eup %83  ;;  %v45_v8 = vmul.f32 0.6931472, %v82_v5 }
  0x33   :  { %v47_v9 = vmul.f32 0.6931472, %v84_v7 }
  0x34   :  { %v49_v10 = vmul.f32 %v48_v6, %v45_v8 }
  0x35   :  { %v50_v11 = vmul.f32 %v48_v6, %v47_v9 }
  0x36   :  { %v51_v12 = vmul.f32 1.442695, %v49_v10 }
  0x37   :  { %v53_v13 = vmul.f32 1.442695, %v50_v11 }
  0x38   :  { %85 = vpow2.f32 %v51_v12 }
  0x39   :  { %87 = vpow2.f32 %v53_v13 }
  0x42   :  { %v86_v14 = vpop.eup %85 }
  0x43   :  { %v88_v15 = vpop.eup %87  ;;  %v55_v16 = vmin.f32 %v86_v14, 1.0 }
  0x44   :  { %v56_v17 = vmin.f32 %v88_v15, 1.0 }
  0x45   :  { %v57_v18 = vsel %vm42_vm0, %v55_v16, 0.0 }
  0x46   :  { %59 = vst [vmem:[#allocation7] sm:$0xff] %v57_v18  ;;  %v58_v19 = vsel %vm43_vm1, %v56_v17, 0.0 }
  0x47   :  { %60 = vst [vmem:[#allocation7 + $0x8] sm:$0xff] %v58_v19 }
  0x48   :  { %132 = shalt.err (!%p129_p1)
}
  0x49   :  { %s133_s8 = scalar_lea.hbm %s205_s2, 256 }
  0x4a   :  { %p134_p2 = scmp.ne.s32.totalorder %s205_s2, %s133_s8  ;;  %p137_p3 = scmp.lt.u32.totalorder %s133_s8, %s205_s2 }
  0x4c   :  { %p139_p4 = pnand %p137_p3, %p134_p2 }
  0x4e   :  { %142 = shalt.err (!%p139_p4)
}
  0x4f   :  { %70 = dma.vmem_to_hbm [thread:$0]  %s68_s4, 256, %s205_s2, [#allocation4]  }
  0x50   :  { %147 = dma.done.wait [#allocation4], 256  }
  0x51   :  { %148 = vsyncadd [#allocation4], 4294967040 }
  0x52   :  { %74 = vsyncpa [#allocation3], 1 }
  0x53   :  { %75 = vsyncpa [#allocation4], 1 }
  0x54   :  { %76 = vsyncpa [#allocation5], 1 }

</bundles_post_ra>
